<compile_context>
chip_gen: v6e
topology: v6e:2x2x1
jax: 0.10.0
libtpu: 0.0.40
codegen_flags: <defaults>
</compile_context>

<pallas_src>
import jax
import jax.numpy as jnp
from jax.experimental import pallas as pl
from jax.experimental.pallas import tpu as pltpu


# ------------------------------- fused kernel ------------------------------ #

def make_fused_kernel(num_blocks, L, O):
    """Build the fused forward kernel.

    Ref order: x2d, w_taps_0 .. w_taps_{nb-1}, w_full, bias_pack, pos_o, out
      x2d       (B*L, C0)   activations, rows r = b*L + t (NLC flattened)
      w_taps_i  (3, Cin, Cout)  conv weights, BN scale folded, tap-major
      w_full    (C_last, L*O)   linear weight, PyTorch flatten order folded
      bias_pack (nb+1, Wmax)    rows: folded conv/BN bias per block, then lin_b
      pos_o     (B*L, 1) int32  = (r % L) * O
    """

    def kernel(*refs):
        x_ref = refs[0]
        w_refs = refs[1:1 + num_blocks]
        wlin_ref, bias_ref, pos_ref, o_ref = refs[1 + num_blocks:]

        h = x_ref[...]                              # (n, C0) f32
        n = h.shape[0]
        B = n // L
        pos_o = pos_ref[...]                        # (n, 1) int32, = (r % L) * O

        # Shift matrices built once from iotas (all-VPU/compare work, ~1 vreg
        # group).  They implement the t-1 / t+1 row shifts AND the conv zero
        # padding at batch boundaries, so no roll/concat/mask is needed.
        rr = jax.lax.broadcasted_iota(jnp.int32, (n, n), 0)   # destination row
        ss = jax.lax.broadcasted_iota(jnp.int32, (n, n), 1)   # source row
        s_dn = ((ss == rr - 1) & (pos_o != 0)).astype(jnp.float32)            # x[t-1]
        s_up = ((ss == rr + 1) & (pos_o != (L - 1) * O)).astype(jnp.float32)  # x[t+1]

        # ---- Conv1d(k=3, pad=1) + folded BN + ReLU blocks --------------------
        for i in range(num_blocks):
            w_ref = w_refs[i]                       # (3, Cin, Cout), scale folded
            cout = w_ref.shape[2]
            prev = jnp.dot(s_dn, h, preferred_element_type=jnp.float32)
            nxt = jnp.dot(s_up, h, preferred_element_type=jnp.float32)
            y = (jnp.dot(prev, w_ref[0], preferred_element_type=jnp.float32)
                 + jnp.dot(h, w_ref[1], preferred_element_type=jnp.float32)
                 + jnp.dot(nxt, w_ref[2], preferred_element_type=jnp.float32))
            y = y + bias_ref[i:i + 1, 0:cout]       # folded conv bias + BN bias
            h = jnp.maximum(y, 0.0)                 # ReLU

        # ---- Flatten (PyTorch order c*L + t, folded into w_full) + Linear ----
        #   z[r, t'*O + o] = sum_c h[r, c] * lin_w[o, c*L + t']
        #   t_mask keeps only t' == (r mod L); b_sel sums the L rows of each
        #   batch element; the O-wide column groups are then folded by halving.
        z = jnp.dot(h, wlin_ref[...], preferred_element_type=jnp.float32)   # (n, L*O)
        j_i = jax.lax.broadcasted_iota(jnp.int32, (n, L * O), 1)
        t_mask = ((j_i >= pos_o) & (j_i < pos_o + O)).astype(jnp.float32)
        zq = z * t_mask

        r_i = jax.lax.broadcasted_iota(jnp.int32, (B, n), 1)
        b_i = jax.lax.broadcasted_iota(jnp.int32, (B, n), 0)
        b_sel = ((r_i >= b_i * L) & (r_i < (b_i + 1) * L)).astype(jnp.float32)
        p = jnp.dot(b_sel, zq, preferred_element_type=jnp.float32)          # (B, L*O)

        # Sum the L O-wide column groups (log-time lane-slice folds).
        groups, carry = L, None
        while groups > 1:
            if groups % 2 == 1:
                last = p[:, (groups - 1) * O:groups * O]
                carry = last if carry is None else carry + last
                groups -= 1
            half = groups // 2
            p = p[:, :half * O] + p[:, half * O:groups * O]
            groups = half
        out = p if carry is None else p + carry

        out = out + bias_ref[num_blocks:num_blocks + 1, 0:O]                # lin_b
        o_ref[...] = out.astype(o_ref.dtype)

    return kernel


# ------------------------------ host wrappers ------------------------------ #

def prepare_params(params, input_size, output_size, batch, eps=1e-5):
    """One-time (outside jit) BN folding, weight re-layout and operand packing."""
    L, O, B = input_size, output_size, batch

    w_taps, biases, couts = [], [], []
    for blk in params["blocks"]:
        w = blk["conv_w"]                                    # (Cout, Cin, 3)
        cout = w.shape[0]
        inv_std = 1.0 / jnp.sqrt(blk["bn_var"] + eps)
        scale = blk["bn_gamma"] * inv_std                    # (Cout,)
        bias = blk["bn_beta"] + scale * (blk["conv_b"] - blk["bn_mean"])
        # (3, Cin, Cout) tap-major, with the BN scale folded into the weights.
        w_taps.append(jnp.transpose(w, (2, 1, 0)) * scale[None, None, :])
        biases.append(bias)
        couts.append(cout)

    c_last = couts[-1]
    # w_full[c, t*O + o] = lin_w[o, c*L + t]  (PyTorch flatten order folded in)
    wl3 = jnp.transpose(params["lin_w"].reshape(O, c_last, L), (2, 1, 0))   # (L, C, O)
    w_full = jnp.transpose(wl3, (1, 0, 2)).reshape(c_last, L * O)

    # Pack all per-channel biases + the linear bias into one small operand.
    wmax = max(couts + [O])
    rows = [jnp.pad(b, (0, wmax - b.shape[0])) for b in biases]
    rows.append(jnp.pad(params["lin_b"], (0, wmax - O)))
    bias_pack = jnp.stack(rows, axis=0)                                      # (nb+1, wmax)

    pos_o = ((jnp.arange(B * L) % L) * O).astype(jnp.int32)[:, None]         # (B*L, 1)

    return {"w_taps": w_taps, "w_full": w_full,
            "bias_pack": bias_pack, "pos_o": pos_o}


def cnn1d_tiny_forward(x_ncl, prep):
    """Forward pass. x_ncl: (B, C_in, L) float32 -> (B, output_size)."""
    B, C0, L = x_ncl.shape
    O = prep["w_full"].shape[1] // L
    n = B * L

    # NCL -> NLC flattened; fused into the pallas operand via allow_input_fusion.
    x2d = jnp.transpose(x_ncl, (0, 2, 1)).reshape(n, C0)

    num_blocks = len(prep["w_taps"])
    kernel = make_fused_kernel(num_blocks, L, O)

    args = [x2d, *prep["w_taps"], prep["w_full"], prep["bias_pack"], prep["pos_o"]]

    # Truthful (tiny) cost estimate so XLA does not schedule conservatively.
    flops = 0
    for w in prep["w_taps"]:
        _, cin, cout = w.shape
        flops += 2 * n * 3 * cin * cout + 2 * 2 * n * n * cout
    flops += 2 * n * prep["w_full"].shape[0] * (L * O) + 2 * B * n * (L * O)
    bytes_accessed = sum(int(a.size) * a.dtype.itemsize for a in args) + B * O * 4

    vmem_spec = pl.BlockSpec(memory_space=pltpu.MemorySpace.VMEM)

    return pl.pallas_call(
        kernel,
        out_shape=jax.ShapeDtypeStruct((B, O), jnp.float32),
        in_specs=[vmem_spec] * len(args),
        out_specs=vmem_spec,
        compiler_params=pltpu.CompilerParams(
            allow_input_fusion=[True] + [False] * (len(args) - 1)),
        cost_estimate=pl.CostEstimate(flops=int(flops), transcendentals=0,
                                      bytes_accessed=int(bytes_accessed)),
    )(*args)


# --------------------------- params & reference ---------------------------- #

def init_params(key, input_size, in_channels, hidden_channels, output_size):
    """Deterministic synthetic parameters matching the PyTorch module's shapes."""
    params = {"blocks": []}
    cin = in_channels
    for cout in hidden_channels:
        key, k1, k2, k3, k4 = jax.random.split(key, 5)
        fan_in = cin * 3
        bound = 1.0 / jnp.sqrt(fan_in)
        blk = {
            "conv_w": jax.random.uniform(k1, (cout, cin, 3), jnp.float32, -bound, bound),
            "conv_b": jax.random.uniform(k2, (cout,), jnp.float32, -bound, bound),
            "bn_gamma": 1.0 + 0.1 * jax.random.normal(k3, (cout,), jnp.float32),
            "bn_beta": 0.1 * jax.random.normal(k4, (cout,), jnp.float32),
            "bn_mean": jnp.zeros((cout,), jnp.float32),
            "bn_var": jnp.ones((cout,), jnp.float32),
        }
        params["blocks"].append(blk)
        cin = cout
    key, k1, k2 = jax.random.split(key, 3)
    fan_in = cin * input_size
    bound = 1.0 / jnp.sqrt(fan_in)
    params["lin_w"] = jax.random.uniform(
        k1, (output_size, cin * input_size), jnp.float32, -bound, bound)
    params["lin_b"] = jax.random.uniform(k2, (output_size,), jnp.float32, -bound, bound)
    return params


def reference_forward(x_ncl, params, eps=1e-5):
    """Pure-JAX (non-Pallas) reference mirroring the PyTorch module (eval mode)."""
    h = x_ncl
    L = x_ncl.shape[-1]
    for blk in params["blocks"]:
        w = blk["conv_w"]                                   # (Cout, Cin, 3)
        xp = jnp.pad(h, ((0, 0), (0, 0), (1, 1)))
        y = sum(jnp.einsum("bil,oi->bol", xp[:, :, k:k + L], w[:, :, k])
                for k in range(3))
        y = y + blk["conv_b"][None, :, None]
        inv_std = 1.0 / jnp.sqrt(blk["bn_var"] + eps)
        y = (y - blk["bn_mean"][None, :, None]) * inv_std[None, :, None]
        y = y * blk["bn_gamma"][None, :, None] + blk["bn_beta"][None, :, None]
        h = jnp.maximum(y, 0.0)
    flat = h.reshape(h.shape[0], -1)                        # (B, C*L) PyTorch order
    return flat @ params["lin_w"].T + params["lin_b"]


# ----------------------------------- main ----------------------------------- #

if __name__ == "__main__":
    batch = 2
    input_size = 16            # L
    in_channels = 4
    hidden_channels = [8, 16]
    output_size = 10

    key = jax.random.PRNGKey(0)
    key, kx = jax.random.split(key)
    x = jax.random.normal(kx, (batch, in_channels, input_size), jnp.float32)
    params = init_params(key, input_size, in_channels, hidden_channels, output_size)

    # One-time parameter preparation (BN folding, weight layouts, packing).
    prep = prepare_params(params, input_size, output_size, batch)

    fwd = jax.jit(cnn1d_tiny_forward)
    out = fwd(x, prep)
    jax.block_until_ready(out)

    assert out.shape == (batch, output_size), out.shape
    assert out.dtype == jnp.float32

    ref = reference_forward(x, params)
    err = float(jnp.max(jnp.abs(out - ref)))
    assert err < 1e-3, f"max abs error vs reference: {err}"

    print("KERNEL_OK")
</pallas_src>

<mosaic_0001>
module attributes {stable_mosaic.version = 11 : i64} {
  func.func @kernel(%arg0: memref<32x4xf32, #tpu.memory_space<vmem>>, %arg1: memref<3x4x8xf32, #tpu.memory_space<vmem>>, %arg2: memref<3x8x16xf32, #tpu.memory_space<vmem>>, %arg3: memref<16x160xf32, #tpu.memory_space<vmem>>, %arg4: memref<3x16xf32, #tpu.memory_space<vmem>>, %arg5: memref<32x1xi32, #tpu.memory_space<vmem>>, %arg6: memref<2x10xf32, #tpu.memory_space<vmem>>) attributes {dimension_semantics = [], scalar_prefetch = 0 : i64, scratch_operands = 0 : i64, tpu.core_type = #tpu.core_type<tc>} {
    %c0 = arith.constant 0 : index
    %c0_0 = arith.constant 0 : index
    %0 = vector.load %arg0[%c0, %c0_0] : memref<32x4xf32, #tpu.memory_space<vmem>>, vector<32x4xf32>
    %c0_1 = arith.constant 0 : index
    %c0_2 = arith.constant 0 : index
    %1 = vector.load %arg5[%c0_1, %c0_2] : memref<32x1xi32, #tpu.memory_space<vmem>>, vector<32x1xi32>
    %2 = tpu.iota {dimensions = array<i32: 0>} : vector<32x32xi32>
    %3 = tpu.iota {dimensions = array<i32: 1>} : vector<32x32xi32>
    %c1_i32 = arith.constant 1 : i32
    %4 = vector.broadcast %c1_i32 : i32 to vector<32x32xi32>
    %5 = arith.subi %2, %4 : vector<32x32xi32>
    %6 = arith.cmpi eq, %3, %5 : vector<32x32xi32>
    %c0_i32 = arith.constant 0 : i32
    %7 = vector.broadcast %c0_i32 : i32 to vector<32x1xi32>
    %8 = arith.cmpi ne, %1, %7 : vector<32x1xi32>
    %9 = vector.broadcast %8 : vector<32x1xi1> to vector<32x32xi1>
    %10 = arith.andi %6, %9 : vector<32x32xi1>
    %11 = arith.extui %10 : vector<32x32xi1> to vector<32x32xi32>
    %12 = arith.sitofp %11 : vector<32x32xi32> to vector<32x32xf32>
    %c1_i32_3 = arith.constant 1 : i32
    %13 = vector.broadcast %c1_i32_3 : i32 to vector<32x32xi32>
    %14 = arith.addi %2, %13 : vector<32x32xi32>
    %15 = arith.cmpi eq, %3, %14 : vector<32x32xi32>
    %c150_i32 = arith.constant 150 : i32
    %16 = vector.broadcast %c150_i32 : i32 to vector<32x1xi32>
    %17 = arith.cmpi ne, %1, %16 : vector<32x1xi32>
    %18 = vector.broadcast %17 : vector<32x1xi1> to vector<32x32xi1>
    %19 = arith.andi %15, %18 : vector<32x32xi1>
    %20 = arith.extui %19 : vector<32x32xi1> to vector<32x32xi32>
    %21 = arith.sitofp %20 : vector<32x32xi32> to vector<32x32xf32>
    %cst = arith.constant dense<0.000000e+00> : vector<32x4xf32>
    %22 = tpu.matmul %12, %0, %cst {dimension_numbers = #tpu.dot_dimension_numbers<[1], [0], [0], [1], [0, 0, 1, 1], [], []>} : vector<32x32xf32>, vector<32x4xf32>, vector<32x4xf32> -> vector<32x4xf32>
    %cst_4 = arith.constant dense<0.000000e+00> : vector<32x4xf32>
    %23 = tpu.matmul %21, %0, %cst_4 {dimension_numbers = #tpu.dot_dimension_numbers<[1], [0], [0], [1], [0, 0, 1, 1], [], []>} : vector<32x32xf32>, vector<32x4xf32>, vector<32x4xf32> -> vector<32x4xf32>
    %c0_5 = arith.constant 0 : index
    %c0_6 = arith.constant 0 : index
    %c0_7 = arith.constant 0 : index
    %24 = vector.load %arg1[%c0_5, %c0_6, %c0_7] : memref<3x4x8xf32, #tpu.memory_space<vmem>>, vector<1x4x8xf32>
    %25 = vector.shape_cast %24 : vector<1x4x8xf32> to vector<4x8xf32>
    %cst_8 = arith.constant dense<0.000000e+00> : vector<32x8xf32>
    %26 = tpu.matmul %22, %25, %cst_8 {dimension_numbers = #tpu.dot_dimension_numbers<[1], [0], [0], [1], [0, 0, 1, 1], [], []>} : vector<32x4xf32>, vector<4x8xf32>, vector<32x8xf32> -> vector<32x8xf32>
    %c1 = arith.constant 1 : index
    %c0_9 = arith.constant 0 : index
    %c0_10 = arith.constant 0 : index
    %27 = vector.load %arg1[%c1, %c0_9, %c0_10] : memref<3x4x8xf32, #tpu.memory_space<vmem>>, vector<1x4x8xf32>
    %28 = vector.shape_cast %27 : vector<1x4x8xf32> to vector<4x8xf32>
    %cst_11 = arith.constant dense<0.000000e+00> : vector<32x8xf32>
    %29 = tpu.matmul %0, %28, %cst_11 {dimension_numbers = #tpu.dot_dimension_numbers<[1], [0], [0], [1], [0, 0, 1, 1], [], []>} : vector<32x4xf32>, vector<4x8xf32>, vector<32x8xf32> -> vector<32x8xf32>
    %30 = arith.addf %26, %29 : vector<32x8xf32>
    %c2 = arith.constant 2 : index
    %c0_12 = arith.constant 0 : index
    %c0_13 = arith.constant 0 : index
    %31 = vector.load %arg1[%c2, %c0_12, %c0_13] : memref<3x4x8xf32, #tpu.memory_space<vmem>>, vector<1x4x8xf32>
    %32 = vector.shape_cast %31 : vector<1x4x8xf32> to vector<4x8xf32>
    %cst_14 = arith.constant dense<0.000000e+00> : vector<32x8xf32>
    %33 = tpu.matmul %23, %32, %cst_14 {dimension_numbers = #tpu.dot_dimension_numbers<[1], [0], [0], [1], [0, 0, 1, 1], [], []>} : vector<32x4xf32>, vector<4x8xf32>, vector<32x8xf32> -> vector<32x8xf32>
    %34 = arith.addf %30, %33 : vector<32x8xf32>
    %c0_15 = arith.constant 0 : index
    %c0_16 = arith.constant 0 : index
    %35 = vector.load %arg4[%c0_15, %c0_16] : memref<3x16xf32, #tpu.memory_space<vmem>>, vector<1x8xf32>
    %36 = vector.broadcast %35 : vector<1x8xf32> to vector<32x8xf32>
    %37 = arith.addf %34, %36 : vector<32x8xf32>
    %cst_17 = arith.constant 0.000000e+00 : f32
    %38 = vector.broadcast %cst_17 : f32 to vector<32x8xf32>
    %39 = arith.maximumf %37, %38 : vector<32x8xf32>
    %cst_18 = arith.constant dense<0.000000e+00> : vector<32x8xf32>
    %40 = tpu.matmul %12, %39, %cst_18 {dimension_numbers = #tpu.dot_dimension_numbers<[1], [0], [0], [1], [0, 0, 1, 1], [], []>} : vector<32x32xf32>, vector<32x8xf32>, vector<32x8xf32> -> vector<32x8xf32>
    %cst_19 = arith.constant dense<0.000000e+00> : vector<32x8xf32>
    %41 = tpu.matmul %21, %39, %cst_19 {dimension_numbers = #tpu.dot_dimension_numbers<[1], [0], [0], [1], [0, 0, 1, 1], [], []>} : vector<32x32xf32>, vector<32x8xf32>, vector<32x8xf32> -> vector<32x8xf32>
    %c0_20 = arith.constant 0 : index
    %c0_21 = arith.constant 0 : index
    %c0_22 = arith.constant 0 : index
    %42 = vector.load %arg2[%c0_20, %c0_21, %c0_22] : memref<3x8x16xf32, #tpu.memory_space<vmem>>, vector<1x8x16xf32>
    %43 = vector.shape_cast %42 : vector<1x8x16xf32> to vector<8x16xf32>
    %cst_23 = arith.constant dense<0.000000e+00> : vector<32x16xf32>
    %44 = tpu.matmul %40, %43, %cst_23 {dimension_numbers = #tpu.dot_dimension_numbers<[1], [0], [0], [1], [0, 0, 1, 1], [], []>} : vector<32x8xf32>, vector<8x16xf32>, vector<32x16xf32> -> vector<32x16xf32>
    %c1_24 = arith.constant 1 : index
    %c0_25 = arith.constant 0 : index
    %c0_26 = arith.constant 0 : index
    %45 = vector.load %arg2[%c1_24, %c0_25, %c0_26] : memref<3x8x16xf32, #tpu.memory_space<vmem>>, vector<1x8x16xf32>
    %46 = vector.shape_cast %45 : vector<1x8x16xf32> to vector<8x16xf32>
    %cst_27 = arith.constant dense<0.000000e+00> : vector<32x16xf32>
    %47 = tpu.matmul %39, %46, %cst_27 {dimension_numbers = #tpu.dot_dimension_numbers<[1], [0], [0], [1], [0, 0, 1, 1], [], []>} : vector<32x8xf32>, vector<8x16xf32>, vector<32x16xf32> -> vector<32x16xf32>
    %48 = arith.addf %44, %47 : vector<32x16xf32>
    %c2_28 = arith.constant 2 : index
    %c0_29 = arith.constant 0 : index
    %c0_30 = arith.constant 0 : index
    %49 = vector.load %arg2[%c2_28, %c0_29, %c0_30] : memref<3x8x16xf32, #tpu.memory_space<vmem>>, vector<1x8x16xf32>
    %50 = vector.shape_cast %49 : vector<1x8x16xf32> to vector<8x16xf32>
    %cst_31 = arith.constant dense<0.000000e+00> : vector<32x16xf32>
    %51 = tpu.matmul %41, %50, %cst_31 {dimension_numbers = #tpu.dot_dimension_numbers<[1], [0], [0], [1], [0, 0, 1, 1], [], []>} : vector<32x8xf32>, vector<8x16xf32>, vector<32x16xf32> -> vector<32x16xf32>
    %52 = arith.addf %48, %51 : vector<32x16xf32>
    %c1_32 = arith.constant 1 : index
    %c0_33 = arith.constant 0 : index
    %53 = vector.load %arg4[%c1_32, %c0_33] : memref<3x16xf32, #tpu.memory_space<vmem>>, vector<1x16xf32>
    %54 = vector.broadcast %53 : vector<1x16xf32> to vector<32x16xf32>
    %55 = arith.addf %52, %54 : vector<32x16xf32>
    %cst_34 = arith.constant 0.000000e+00 : f32
    %56 = vector.broadcast %cst_34 : f32 to vector<32x16xf32>
    %57 = arith.maximumf %55, %56 : vector<32x16xf32>
    %c0_35 = arith.constant 0 : index
    %c0_36 = arith.constant 0 : index
    %58 = vector.load %arg3[%c0_35, %c0_36] : memref<16x160xf32, #tpu.memory_space<vmem>>, vector<16x160xf32>
    %cst_37 = arith.constant dense<0.000000e+00> : vector<32x160xf32>
    %59 = tpu.matmul %57, %58, %cst_37 {dimension_numbers = #tpu.dot_dimension_numbers<[1], [0], [0], [1], [0, 0, 1, 1], [], []>} : vector<32x16xf32>, vector<16x160xf32>, vector<32x160xf32> -> vector<32x160xf32>
    %60 = tpu.iota {dimensions = array<i32: 1>} : vector<32x160xi32>
    %61 = vector.broadcast %1 : vector<32x1xi32> to vector<32x160xi32>
    %62 = arith.cmpi sge, %60, %61 : vector<32x160xi32>
    %c10_i32 = arith.constant 10 : i32
    %63 = vector.broadcast %c10_i32 : i32 to vector<32x1xi32>
    %64 = arith.addi %1, %63 : vector<32x1xi32>
    %65 = vector.broadcast %64 : vector<32x1xi32> to vector<32x160xi32>
    %66 = arith.cmpi slt, %60, %65 : vector<32x160xi32>
    %67 = arith.andi %62, %66 : vector<32x160xi1>
    %68 = arith.extui %67 : vector<32x160xi1> to vector<32x160xi32>
    %69 = arith.sitofp %68 : vector<32x160xi32> to vector<32x160xf32>
    %70 = arith.mulf %59, %69 : vector<32x160xf32>
    %71 = tpu.iota {dimensions = array<i32: 1>} : vector<2x32xi32>
    %72 = tpu.iota {dimensions = array<i32: 0>} : vector<2x32xi32>
    %c16_i32 = arith.constant 16 : i32
    %73 = vector.broadcast %c16_i32 : i32 to vector<2x32xi32>
    %74 = arith.muli %72, %73 : vector<2x32xi32>
    %75 = arith.cmpi sge, %71, %74 : vector<2x32xi32>
    %c1_i32_38 = arith.constant 1 : i32
    %76 = vector.broadcast %c1_i32_38 : i32 to vector<2x32xi32>
    %77 = arith.addi %72, %76 : vector<2x32xi32>
    %c16_i32_39 = arith.constant 16 : i32
    %78 = vector.broadcast %c16_i32_39 : i32 to vector<2x32xi32>
    %79 = arith.muli %77, %78 : vector<2x32xi32>
    %80 = arith.cmpi slt, %71, %79 : vector<2x32xi32>
    %81 = arith.andi %75, %80 : vector<2x32xi1>
    %82 = arith.extui %81 : vector<2x32xi1> to vector<2x32xi32>
    %83 = arith.sitofp %82 : vector<2x32xi32> to vector<2x32xf32>
    %cst_40 = arith.constant dense<0.000000e+00> : vector<2x160xf32>
    %84 = tpu.matmul %83, %70, %cst_40 {dimension_numbers = #tpu.dot_dimension_numbers<[1], [0], [0], [1], [0, 0, 1, 1], [], []>} : vector<2x32xf32>, vector<32x160xf32>, vector<2x160xf32> -> vector<2x160xf32>
    %85 = vector.extract_strided_slice %84 {offsets = [0, 0], sizes = [2, 80], strides = [1, 1]} : vector<2x160xf32> to vector<2x80xf32>
    %86 = vector.extract_strided_slice %84 {offsets = [0, 80], sizes = [2, 80], strides = [1, 1]} : vector<2x160xf32> to vector<2x80xf32>
    %87 = arith.addf %85, %86 : vector<2x80xf32>
    %88 = vector.extract_strided_slice %87 {offsets = [0, 0], sizes = [2, 40], strides = [1, 1]} : vector<2x80xf32> to vector<2x40xf32>
    %89 = vector.extract_strided_slice %87 {offsets = [0, 40], sizes = [2, 40], strides = [1, 1]} : vector<2x80xf32> to vector<2x40xf32>
    %90 = arith.addf %88, %89 : vector<2x40xf32>
    %91 = vector.extract_strided_slice %90 {offsets = [0, 0], sizes = [2, 20], strides = [1, 1]} : vector<2x40xf32> to vector<2x20xf32>
    %92 = vector.extract_strided_slice %90 {offsets = [0, 20], sizes = [2, 20], strides = [1, 1]} : vector<2x40xf32> to vector<2x20xf32>
    %93 = arith.addf %91, %92 : vector<2x20xf32>
    %94 = vector.extract_strided_slice %93 {offsets = [0, 0], sizes = [2, 10], strides = [1, 1]} : vector<2x20xf32> to vector<2x10xf32>
    %95 = vector.extract_strided_slice %93 {offsets = [0, 10], sizes = [2, 10], strides = [1, 1]} : vector<2x20xf32> to vector<2x10xf32>
    %96 = arith.addf %94, %95 : vector<2x10xf32>
    %c2_41 = arith.constant 2 : index
    %c0_42 = arith.constant 0 : index
    %97 = vector.load %arg4[%c2_41, %c0_42] : memref<3x16xf32, #tpu.memory_space<vmem>>, vector<1x10xf32>
    %98 = vector.broadcast %97 : vector<1x10xf32> to vector<2x10xf32>
    %99 = arith.addf %96, %98 : vector<2x10xf32>
    %c0_43 = arith.constant 0 : index
    %c0_44 = arith.constant 0 : index
    %100 = vector.load %arg6[%c0_43, %c0_44] : memref<2x10xf32, #tpu.memory_space<vmem>>, vector<2x10xf32>
    tpu.vector_store %arg6[%c0_43, %c0_44], %99 {strides = array<i32>} : memref<2x10xf32, #tpu.memory_space<vmem>>, vector<2x10xf32>,
    return
  }
}

</mosaic_0001>

<bundles_post_ra>
// kernel: cnn1d_tiny_forward.1
= control target key start
LH: loop header
LB: loop body
LE: loop exit
PB: predicated region body
PF: predicated region fallthrough
CT: control target
= control target key end

     0   :  { %v1716_v3 = vmov 0   ;;  %s2000_s0 = inlined_call_operand.vmem [shape: f32[32,4], index: 0, kind: input, shape index: {}]   ;;  %s2001_s1 = inlined_call_operand.vmem [shape: f32[3,4,8], index: 1, kind: input, shape index: {}]   ;;  %s2002_s2 = inlined_call_operand.vmem [shape: f32[3,8,16], index: 2, kind: input, shape index: {}]   ;;  %s2003_s3 = inlined_call_operand.vmem [shape: f32[16,160], index: 3, kind: input, shape index: {}]   ;;  %s2004_s4 = inlined_call_operand.vmem [shape: f32[3,16], index: 4, kind: input, shape index: {}]   ;;  %s2005_s5 = inlined_call_operand.vmem [shape: s32[32,1], index: 5, kind: input, shape index: {}]   ;;  %s2006_s6 = inlined_call_operand.hbm [shape: f32[2,10], index: 6, kind: output, shape index: {}]  }
   0x1   :  { %v30_v0 = vld [vmem:[%s2005_s5 + $0x10] sm:$0xff]  ;;  %v28_v1 = vld [vmem:[%s2005_s5] sm:$0xff]  ;;  %v31_v2 = vld [vmem:[%s2005_s5 + $0x18] sm:$0xff]  ;;  %1693 = vset.pattern.permute.xlu1 %v1716_v3  ;;  %1692 = vset.pattern.permute.xlu0 %v1716_v3 }
   0x2   :  { %vm49_vm0 = vcmp.ne.s32.totalorder %v30_v0, 0  ;;  %vm47_vm1 = vcmp.ne.s32.totalorder %v28_v1, 0  ;;  %vm50_vm2 = vcmp.ne.s32.totalorder %v31_v2, 0  ;;  %v29_v4 = vld [vmem:[%s2005_s5 + $0x8] sm:$0xff]  ;;  %v1773_v5 = vld [vmem:[%s2000_s0 + $0x18] sm:$0xff]  ;;  %v1779_v8 = vld [vmem:[%s2000_s0 + $0x10] sm:$0xff] }
   0x3   :  { %v53_v6 = vsel %vm49_vm0, 1, %v1716_v3  ;;  %v51_v7 = vsel %vm47_vm1, 1, %v1716_v3  ;;  %vm48_vm3 = vcmp.ne.s32.totalorder %v29_v4, 0  ;;  %1579 = vmatprep.subr.mxu1 %v1773_v5 }
   0x4   :  { %62 = vperm.xlu1 %1693, %v53_v6   ;;  %56 = vperm.xlu0 %1692, %v51_v7  }
   0x5   :  { %11 = vsyncpa [#allocation3], 0  ;;  %v54_v9 = vsel %vm50_vm2, 1, %v1716_v3  ;;  %v52_v10 = vsel %vm48_vm3, 1, %v1716_v3  ;;  %1580 = vmatpush3.msra.mxu1 %v1773_v5  ;;  %vm92_vm4 = vcmp.ne.s32.totalorder %v29_v4, 150  ;;  %vm91_vm5 = vcmp.ne.s32.totalorder %v28_v1, 150 }
   0x6   :  { %1581 = vmatprep.subr.mxu1 %v1779_v8  ;;  %v1786_v11 = vld [vmem:[%s2000_s0 + $0x8] sm:$0xff]  ;;  %v1792_v12 = vld [vmem:[%s2000_s0] sm:$0xff]  ;;  %v96_v13 = vsel %vm92_vm4, 1, %v1716_v3  ;;  %v95_v14 = vsel %vm91_vm5, 1, %v1716_v3  ;;  %vm94_vm6 = vcmp.ne.s32.totalorder %v31_v2, 150  ;;  %vm93_vm7 = vcmp.ne.s32.totalorder %v30_v0, 150 }
   0x7   :  { %1582 = vmatpush3.msra.mxu1 %v1779_v8  ;;  %v98_v15 = vsel %vm94_vm6, 1, %v1716_v3  ;;  %v97_v16 = vsel %vm93_vm7, 1, %v1716_v3  ;;  %v1260_v17 = vadd.s32 10, %v31_v2  ;;  %v1259_v18 = vadd.s32 10, %v30_v0  ;;  %v1461_v52 = vld [vmem:[%s2001_s1 + $0x4] sm:$0xf] }
   0x8   :  { %65 = vperm.xlu1 %1693, %v54_v9   ;;  %59 = vperm.xlu0 %1692, %v52_v10   ;;  %v1258_v19 = vadd.s32 10, %v29_v4  ;;  %v1257_v20 = vadd.s32 10, %v28_v1  ;;  %v32_v21 = vlaneseq  ;;  %vm2007_vm12 = vcmask 261120   ;;  %v322_v53 = vld [vmem:[%s2001_s1] sm:$0xf]  ;;  %s1719_s5 = smov 88  }
   0x9   :  { %1583 = vmatprep.subr.mxu1 %v1786_v11  ;;  %v1717_v34 = vmov 0.0   ;;  %v1472_v54 = vld [vmem:[%s2001_s1 + $0x8] sm:$0xf]  ;;  %s1720_s9 = smov 108   ;;  %s1721_s10 = smov 118  }
   0xa   :  { %1584 = vmatpush3.msra.mxu1 %v1786_v11  ;;  %v1799_v22 = vshrl.u32 %v32_v21, 7  ;;  %v1802_v24 = vand.u32 127, %v32_v21  ;;  %s1722_s12 = smov [#allocation2]  }
   0xb   :  { %1585 = vmatprep.subr.mxu1 %v1792_v12  ;;  %s1433_s13 = sshll.u32 %s1722_s12, 4  ;;  %s1434_s13 = int_to_ptr.vmem [resolvable:$true] %s1433_s13 }
   0xc   :  { %103 = vperm.xlu1 %1693, %v96_v13   ;;  %100 = vperm.xlu0 %1692, %v95_v14   ;;  %v35_v23 = vadd.s32 16, %v1799_v22  ;;  %v1441_v25 = vadd.s32 4294967295, %v1799_v22  ;;  %v34_v26 = vadd.s32 8, %v1799_v22  ;;  %v36_v28 = vadd.s32 24, %v1799_v22  ;;  %s1694_s14 = scalar_lea.vmem %s1434_s13, 32  ;;  %p1699_p1 = scmp.lt.s32.totalorder %s1434_s13, %s1434_s13 }
   0xd   :  { %1586 = vmatpush3.msra.mxu1 %v1792_v12  ;;  %v1814_v37 = vadd.s32 1, %v1799_v22  ;;  %p1695_p0 = scmp.ne.s32.totalorder %s1434_s13, %s1694_s14  ;;  %p1700_p2 = scmp.lt.s32.totalorder %s1694_s14, %s1694_s14 }
   0xe   :  { %1593 = vmatprep.subr.mxu1 %v1773_v5  ;;  %v1443_v27 = vadd.s32 4294967295, %v35_v23  ;;  %vm43_vm8 = vcmp.eq.s32.totalorder %v1802_v24, %v1441_v25  ;;  %v1442_v31 = vadd.s32 4294967295, %v34_v26  ;;  %v1444_v32 = vadd.s32 4294967295, %v36_v28 }
   0xf   :  { %v84_v38 = vadd.s32 1, %v34_v26  ;;  %vm87_vm4 = vcmp.eq.s32.totalorder %v1802_v24, %v1814_v37  ;;  %v85_v43 = vadd.s32 1, %v35_v23  ;;  %v86_v44 = vadd.s32 1, %v36_v28  ;;  %p1701_p3 = por %p1700_p2, %p1699_p1 }
  0x10   :  { %109 = vperm.xlu1 %1693, %v98_v15   ;;  %106 = vperm.xlu0 %1692, %v97_v16   ;;  %vm45_vm9 = vcmp.eq.s32.totalorder %v1802_v24, %v1443_v27  ;;  %vm44_vm15 = vcmp.eq.s32.totalorder %v1802_v24, %v1442_v31  ;;  %vm46_vm1 = vcmp.eq.s32.totalorder %v1802_v24, %v1444_v32  ;;  %v1478_v16 = vld [vmem:[%s2004_s4] ss:$0 sm:$0xff]  ;;  %v1496_v32 = vld [vmem:[%s2002_s2 + $0x10] sm:$0xff] }
  0x11   :  { %vm88_vm7 = vcmp.eq.s32.totalorder %v1802_v24, %v84_v38  ;;  %v816_v31 = vld [vmem:[%s2002_s2] sm:$0xff]  ;;  %p1702_p4 = pnand %p1701_p3, %p1695_p0 }
  0x14   :  { %1271 = vperm.xlu1 %1693, %v1260_v17   ;;  %1247 = vperm.xlu0 %1692, %v31_v2  }
  0x18   :  { %1268 = vperm.xlu1 %1693, %v1259_v18   ;;  %1244 = vperm.xlu0 %1692, %v30_v0  }
  0x1c   :  { %1265 = vperm.xlu1 %1693, %v1258_v19   ;;  %1241 = vperm.xlu0 %1692, %v29_v4  }
  0x20   :  { %1262 = vperm.xlu1 %1693, %v1257_v20   ;;  %1238 = vperm.xlu0 %1692, %v28_v1  }
  0x7f   :  { %v63_v29 = vpop.permute.xlu1 %62  ;;  %v57_v30 = vpop.permute.xlu0 %56 }
  0x80   :  { %vm69_vm10 = vcmp.eq.s32.totalorder %v63_v29, 1  ;;  %vm67_vm11 = vcmp.eq.s32.totalorder %v57_v30, 1  ;;  %v1487_v30 = vld [vmem:[%s2002_s2 + $0x8] sm:$0xff] }
  0x81   :  { %vm71_vm13 = vmand %vm43_vm8, %vm67_vm11 }
  0x82   :  { %vm73_vm14 = vmand %vm45_vm9, %vm69_vm10  ;;  %v1810_v35 = vsel %vm71_vm13, 1.0, %v1717_v34  ;;  %vm89_vm10 = vcmp.eq.s32.totalorder %v1802_v24, %v85_v43  ;;  %v1133_v43 = vld [vmem:[%s2003_s3 + $0x18] sm:$0xff] }
  0x83   :  { %v66_v33 = vpop.permute.xlu1 %65  ;;  %v60_v36 = vpop.permute.xlu0 %59  ;;  %1587 = vmatprep.mubr.msk.f32.mxu1 %vm2007_vm12, %v1810_v35  ;;  %v1820_v39 = vsel %vm73_vm14, 1.0, %v1717_v34  ;;  %vm90_vm14 = vcmp.eq.s32.totalorder %v1802_v24, %v86_v44  ;;  %v1132_v44 = vld [vmem:[%s2003_s3 + $0x10] sm:$0xff] }
  0x84   :  { %vm68_vm0 = vcmp.eq.s32.totalorder %v60_v36, 1  ;;  %vm70_vm2 = vcmp.eq.s32.totalorder %v66_v33, 1 }
  0x85   :  { %vm72_vm3 = vmand %vm44_vm15, %vm68_vm0 }
  0x86   :  { %v1823_v40 = vsel %vm72_vm3, 1.0, %v1717_v34  ;;  %vm74_vm5 = vmand %vm46_vm1, %vm70_vm2  ;;  %vm338_vm2 = vcmask 1043456   ;;  %vm325_vm3 = vcmask 31744  }
  0x87   :  { %v104_v41 = vpop.permute.xlu1 %103  ;;  %v101_v42 = vpop.permute.xlu0 %100  ;;  %1588 = vmatmul.mubr.msk.f32.vlgmr.msra.gmra.mxu1 %vm2007_vm12, %v1823_v40  ;;  %v1835_v45 = vsel %vm74_vm5, 1.0, %v1717_v34  ;;  %1607 = vmatprep.subr.msk.mxu0 %vm338_vm2, %v1461_v52  ;;  %vm1134_vm5 = vcmask 130048  }
  0x88   :  { %vm111_vm6 = vcmp.eq.s32.totalorder %v101_v42, 1  ;;  %vm112_vm8 = vcmp.eq.s32.totalorder %v104_v41, 1  ;;  %1590 = vmatprep.mubr.msk.f32.mxu1 %vm2007_vm12, %v1820_v39  ;;  %1594 = vmatpush3.msra.mxu1 %v1773_v5 }
  0x89   :  { %vm115_vm9 = vmand %vm87_vm4, %vm111_vm6  ;;  %1595 = vmatprep.subr.mxu1 %v1779_v8  ;;  %1608 = vmatpush3.msk.msra.mxu0 %vm338_vm2, %v1461_v52  ;;  %vm819_vm4 = vcmask 64512  }
  0x8a   :  { %v1449_v46 = vsel %vm115_vm9, 1.0, %v1717_v34  ;;  %1596 = vmatpush3.msra.mxu1 %v1779_v8  ;;  %vm116_vm11 = vmand %vm88_vm7, %vm112_vm8  ;;  %1609 = vmatprep.mubr.msk.f32.mxu0 %vm325_vm3, %v1792_v12 }
  0x8b   :  { %v110_v47 = vpop.permute.xlu1 %109  ;;  %v107_v48 = vpop.permute.xlu0 %106  ;;  %1591 = vmatmul.mubr.msk.f32.gmra.mxu1 %vm2007_vm12, %v1835_v45  ;;  %1597 = vmatprep.subr.mxu1 %v1786_v11  ;;  %v1848_v49 = vsel %vm116_vm11, 1.0, %v1717_v34 }
  0x8c   :  { %vm113_vm13 = vcmp.eq.s32.totalorder %v107_v48, 1  ;;  %vm114_vm15 = vcmp.eq.s32.totalorder %v110_v47, 1  ;;  %1598 = vmatpush3.msra.mxu1 %v1786_v11  ;;  %1601 = vmatprep.mubr.msk.f32.mxu1 %vm2007_vm12, %v1449_v46 }
  0x8d   :  { %vm117_vm0 = vmand %vm89_vm10, %vm113_vm13  ;;  %1599 = vmatprep.subr.mxu1 %v1792_v12  ;;  %1610 = vmatmul.mubr.msk.f32.vlgmr.msra.gmra.mxu0 %vm325_vm3, %v1786_v11 }
  0x8e   :  { %v1851_v50 = vsel %vm117_vm0, 1.0, %v1717_v34  ;;  %1600 = vmatpush3.msra.mxu1 %v1792_v12  ;;  %vm118_vm1 = vmand %vm90_vm14, %vm114_vm15  ;;  %1612 = vmatprep.mubr.msk.f32.mxu0 %vm325_vm3, %v1779_v8 }
  0x8f   :  { %1602 = vmatmul.mubr.msk.f32.vlgmr.msra.gmra.mxu1 %vm2007_vm12, %v1848_v49  ;;  %v1859_v51 = vsel %vm118_vm1, 1.0, %v1717_v34  ;;  %1615 = vmatprep.subr.msk.mxu1 %vm338_vm2, %v322_v53 }
  0x90   :  { %1604 = vmatprep.mubr.msk.f32.mxu1 %vm2007_vm12, %v1851_v50  ;;  %1616 = vmatpush3.msk.msra.mxu1 %vm338_vm2, %v322_v53 }
  0x91   :  { %1623 = vmatprep.subr.msk.mxu0 %vm338_vm2, %v1472_v54  ;;  %1613 = vmatmul.mubr.msk.f32.gmra.mxu0 %vm325_vm3, %v1773_v5 }
  0x92   :  { %1624 = vmatpush3.msk.msra.mxu0 %vm338_vm2, %v1472_v54 }
  0x93   :  { %1605 = vmatmul.mubr.msk.f32.gmra.mxu1 %vm2007_vm12, %v1859_v51 }
 0x147   :  { %v1589_v55 = vpop.f32.mrf.mxu1 }
 0x149   :  { %v206_v56 = vpop.f32.mrf.mxu1 }
 0x14a   :  { %1617 = vmatprep.mubr.msk.f32.mxu1 %vm325_vm3, %v206_v56 }
 0x14b   :  { %v1592_v57 = vpop.f32.mrf.mxu1  ;;  %1618 = vmatmul.mubr.msk.f32.vlgmr.msra.gmra.mxu1 %vm325_vm3, %v1589_v55 }
 0x14d   :  { %v216_v58 = vpop.f32.mrf.mxu1  ;;  %v1611_v63 = vpop.f32.mrf.mxu0 }
 0x14e   :  { %1620 = vmatprep.mubr.msk.f32.mxu1 %vm325_vm3, %v216_v58 }
 0x14f   :  { %v1603_v59 = vpop.f32.mrf.mxu1  ;;  %1621 = vmatmul.mubr.msk.f32.gmra.mxu1 %vm325_vm3, %v1592_v57  ;;  %v408_v0 = vpop.f32.mrf.mxu0 }
 0x150   :  { %1639 = vmatprep.mubr.msk.f32.mxu1 %vm2007_vm12, %v1810_v35 }
 0x151   :  { %v303_v60 = vpop.f32.mrf.mxu1  ;;  %v1614_v2 = vpop.f32.mrf.mxu0 }
 0x152   :  { %1625 = vmatprep.mubr.msk.f32.mxu0 %vm325_vm3, %v303_v60 }
 0x153   :  { %v1606_v61 = vpop.f32.mrf.mxu1  ;;  %1626 = vmatmul.mubr.msk.f32.vlgmr.msra.gmra.mxu0 %vm325_vm3, %v1603_v59  ;;  %v418_v4 = vpop.f32.mrf.mxu0 }
 0x155   :  { %v313_v62 = vpop.f32.mrf.mxu1 }
 0x156   :  { %1628 = vmatprep.mubr.msk.f32.mxu0 %vm325_vm3, %v313_v62 }
 0x157   :  { %1629 = vmatmul.mubr.msk.f32.gmra.mxu0 %vm325_vm3, %v1606_v61  ;;  %v1501_v61 = vld [vmem:[%s2004_s4 + $0x1] ss:$0 sm:$0xff] }
 0x158   :  { %1653 = vmatprep.mubr.msk.f32.mxu0 %vm2007_vm12, %v1449_v46  ;;  %v1130_v46 = vld [vmem:[%s2003_s3] sm:$0xff] }
 0x20b   :  { %v1619_v1 = vpop.f32.mrf.mxu1 }
 0x20c   :  { %v514_v9 = vadd.f32 %v1619_v1, %v1611_v63 }
 0x20d   :  { %v508_v3 = vpop.f32.mrf.mxu1 }
 0x20e   :  { %v509_v12 = vadd.f32 %v508_v3, %v408_v0 }
 0x20f   :  { %v1622_v5 = vpop.f32.mrf.mxu1 }
 0x210   :  { %v524_v10 = vadd.f32 %v1622_v5, %v1614_v2 }
 0x211   :  { %v518_v7 = vpop.f32.mrf.mxu1 }
 0x212   :  { %v519_v13 = vadd.f32 %v518_v7, %v418_v4 }
 0x213   :  { %v1627_v6 = vpop.f32.mrf.mxu0 }
 0x214   :  { %v630_v14 = vadd.f32 %v1627_v6, %v514_v9 }
 0x215   :  { %v610_v8 = vpop.f32.mrf.mxu0 }
 0x216   :  { %v629_v18 = vadd.f32 %v610_v8, %v509_v12  ;;  %v639_v21 = vadd.f32 %v1478_v16, %v630_v14  ;;  %v1272_v12 = vpop.permute.xlu1 %1271 }
 0x217   :  { %v1630_v11 = vpop.f32.mrf.mxu0  ;;  %vm1279_vm8 = vcmp.lt.s32.totalorder %v1802_v24, %v1272_v12 }
 0x218   :  { %v632_v15 = vadd.f32 %v1630_v11, %v524_v10  ;;  %v638_v26 = vadd.f32 %v1478_v16, %v629_v18  ;;  %v643_v28 = vmax.f32 %v639_v21, 0.0  ;;  %v1236_v18 = vadd.s32 128, %v1802_v24 }
 0x219   :  { %v620_v17 = vpop.f32.mrf.mxu0 }
 0x21a   :  { %v641_v19 = vadd.f32 %v1478_v16, %v632_v15  ;;  %v631_v20 = vadd.f32 %v620_v17, %v519_v13  ;;  %v642_v29 = vmax.f32 %v638_v26, 0.0  ;;  %v1248_v13 = vpop.permute.xlu0 %1247  ;;  %v1269_v14 = vpop.permute.xlu1 %1268  ;;  %vm1280_vm6 = vcmp.lt.s32.totalorder %v1236_v18, %v1272_v12 }
 0x21b   :  { %vm1256_vm7 = vcmp.ge.s32.totalorder %v1236_v18, %v1248_v13  ;;  %vm1255_vm9 = vcmp.ge.s32.totalorder %v1802_v24, %v1248_v13  ;;  %vm1278_vm10 = vcmp.lt.s32.totalorder %v1236_v18, %v1269_v14  ;;  %vm1277_vm13 = vcmp.lt.s32.totalorder %v1802_v24, %v1269_v14 }
 0x21c   :  { %v645_v23 = vmax.f32 %v641_v19, 0.0  ;;  %v640_v25 = vadd.f32 %v1478_v16, %v631_v20  ;;  %vm1288_vm15 = vmand %vm1256_vm7, %vm1280_vm6 }
 0x21d   :  { %vm1287_vm2 = vmand %vm1255_vm9, %vm1279_vm8 }
 0x21e   :  { %v644_v27 = vmax.f32 %v640_v25, 0.0  ;;  %1631 = vmatprep.subr.mxu1 %v645_v23  ;;  %1645 = vmatprep.subr.mxu0 %v645_v23  ;;  %v1245_v15 = vpop.permute.xlu0 %1244  ;;  %v1266_v20 = vpop.permute.xlu1 %1265 }
 0x21f   :  { %1632 = vmatpush3.msra.mxu1 %v645_v23  ;;  %1646 = vmatpush3.msra.mxu0 %v645_v23  ;;  %vm1254_vm11 = vcmp.ge.s32.totalorder %v1236_v18, %v1245_v15  ;;  %vm1276_vm0 = vcmp.lt.s32.totalorder %v1236_v18, %v1266_v20  ;;  %vm1275_vm3 = vcmp.lt.s32.totalorder %v1802_v24, %v1266_v20 }
 0x220   :  { %1633 = vmatprep.subr.mxu1 %v644_v27  ;;  %1647 = vmatprep.subr.mxu0 %v644_v27  ;;  %vm2008_vm6 = vcmp.ge.s32.totalorder %v1802_v24, %v1245_v15 }
 0x221   :  { %1634 = vmatpush3.msra.mxu1 %v644_v27  ;;  %1648 = vmatpush3.msra.mxu0 %v644_v27  ;;  %vm1285_vm7 = vmand %vm2008_vm6, %vm1277_vm13 }
 0x222   :  { %1635 = vmatprep.subr.mxu1 %v643_v28  ;;  %1649 = vmatprep.subr.mxu0 %v643_v28  ;;  %v1242_v21 = vpop.permute.xlu0 %1241 }
 0x223   :  { %1636 = vmatpush3.msra.mxu1 %v643_v28  ;;  %1650 = vmatpush3.msra.mxu0 %v643_v28  ;;  %vm1252_vm1 = vcmp.ge.s32.totalorder %v1236_v18, %v1242_v21 }
 0x224   :  { %1637 = vmatprep.subr.mxu1 %v642_v29  ;;  %1651 = vmatprep.subr.mxu0 %v642_v29 }
 0x225   :  { %1638 = vmatpush3.msra.mxu1 %v642_v29  ;;  %1652 = vmatpush3.msra.mxu0 %v642_v29 }
 0x226   :  { %1640 = vmatmul.mubr.msk.f32.vlgmr.msra.gmra.mxu1 %vm2007_vm12, %v1823_v40  ;;  %1654 = vmatmul.mubr.msk.f32.vlgmr.msra.gmra.mxu0 %vm2007_vm12, %v1848_v49 }
 0x227   :  { %1642 = vmatprep.mubr.msk.f32.mxu1 %vm2007_vm12, %v1820_v39  ;;  %1656 = vmatprep.mubr.msk.f32.mxu0 %vm2007_vm12, %v1851_v50 }
 0x228   :  { %1659 = vmatprep.subr.mxu0 %v1487_v30  ;;  %1683 = vmatprep.subr.mxu1 %v1487_v30 }
 0x229   :  { %1660 = vmatpush3.msra.mxu0 %v1487_v30  ;;  %1684 = vmatpush3.msra.mxu1 %v1487_v30 }
 0x22a   :  { %1643 = vmatmul.mubr.msk.f32.gmra.mxu1 %vm2007_vm12, %v1835_v45  ;;  %1657 = vmatmul.mubr.msk.f32.gmra.mxu0 %vm2007_vm12, %v1859_v51  ;;  %v1131_v45 = vld [vmem:[%s2003_s3 + $0x8] sm:$0xff]  ;;  %s1718_s3 = smov 48  }
 0x22b   :  { %1661 = vmatprep.mubr.msk.f32.mxu0 %vm819_vm4, %v642_v29  ;;  %1664 = vmatprep.mubr.msk.f32.mxu1 %vm819_vm4, %v644_v27  ;;  %v1263_v27 = vpop.permute.xlu1 %1262  ;;  %v1315_v29 = vmul.u32 16, %v1814_v37 }
 0x22c   :  { %1667 = vmatprep.subr.mxu0 %v816_v31  ;;  %1675 = vmatprep.subr.mxu1 %v1496_v32  ;;  %vm1273_vm8 = vcmp.lt.s32.totalorder %v1802_v24, %v1263_v27 }
 0x22e   :  { %1662 = vmatmul.mubr.msk.f32.vlgmr.msra.gmra.mxu0 %vm819_vm4, %v643_v28  ;;  %1665 = vmatmul.mubr.msk.f32.vlgmr.msra.gmra.mxu1 %vm819_vm4, %v645_v23  ;;  %v1239_v28 = vpop.permute.xlu0 %1238 }
 0x22f   :  { %1668 = vmatpush3.msra.mxu0 %v816_v31  ;;  %1676 = vmatpush3.msra.mxu1 %v1496_v32  ;;  %v1313_v31 = vmul.u32 16, %v1799_v22  ;;  %vm1250_vm14 = vcmp.ge.s32.totalorder %v1236_v18, %v1239_v28  ;;  %v1513_v32 = vsel %vm1288_vm15, 1.0, %v1717_v34  ;;  %vm1249_vm9 = vcmp.ge.s32.totalorder %v1802_v24, %v1239_v28 }
 0x230   :  { %1175 = vmatprep.subr.mxu0 %v1133_v43  ;;  %v1512_v22 = vsel %vm1287_vm2, 1.0, %v1717_v34  ;;  %vm2013_vm15 = vcmp.lt.s32.totalorder %v1236_v18, %v1263_v27  ;;  %vm1425_vm2 = vcmask 74752  }
 0x231   :  { %vm1978_vm13 = vcmp.ge.s32.totalorder %v1802_v24, %v1313_v31  ;;  %vm1282_vm6 = vmand %vm1250_vm14, %vm2013_vm15  ;;  %vm1400_vm14 = vcmask 392192  }
 0x2e6   :  { %v1641_v33 = vpop.f32.mrf.mxu1  ;;  %v1655_v35 = vpop.f32.mrf.mxu0 }
 0x2e8   :  { %v712_v36 = vpop.f32.mrf.mxu1  ;;  %v797_v38 = vpop.f32.mrf.mxu0 }
 0x2e9   :  { %1669 = vmatprep.mubr.msk.f32.mxu0 %vm819_vm4, %v712_v36  ;;  %1677 = vmatprep.mubr.msk.f32.mxu1 %vm819_vm4, %v797_v38 }
 0x2ea   :  { %v1644_v39 = vpop.f32.mrf.mxu1  ;;  %v1658_v40 = vpop.f32.mrf.mxu0  ;;  %1670 = vmatmul.mubr.msk.f32.vlgmr.msra.gmra.mxu0 %vm819_vm4, %v1641_v33  ;;  %1678 = vmatmul.mubr.msk.f32.vlgmr.msra.gmra.mxu1 %vm819_vm4, %v1655_v35 }
 0x2eb   :  { %1176 = vmatpush1.msra.mxu0 %v1132_v44 }
 0x2ec   :  { %v722_v41 = vpop.f32.mrf.mxu1  ;;  %v807_v42 = vpop.f32.mrf.mxu0  ;;  %1177 = vmatprep.subr.mxu0 %v1131_v45 }
 0x2ed   :  { %1672 = vmatprep.mubr.msk.f32.mxu0 %vm819_vm4, %v722_v41  ;;  %1680 = vmatprep.mubr.msk.f32.mxu1 %vm819_vm4, %v807_v42 }
 0x2ee   :  { %1673 = vmatmul.mubr.msk.f32.gmra.mxu0 %vm819_vm4, %v1644_v39  ;;  %1681 = vmatmul.mubr.msk.f32.gmra.mxu1 %vm819_vm4, %v1658_v40  ;;  %v1663_v47 = vpop.f32.mrf.mxu0  ;;  %v1666_v48 = vpop.f32.mrf.mxu1  ;;  %vm1251_vm4 = vcmp.ge.s32.totalorder %v1802_v24, %v1242_v21  ;;  %v1510_v40 = vsel %vm1285_vm7, 1.0, %v1717_v34 }
 0x2ef   :  { %1211 = vmatprep.mubr.f32.mxu0 %v1717_v34  ;;  %1387 = vmatprep.mubr.f32.mxu1 %v1717_v34  ;;  %vm1283_vm12 = vmand %vm1251_vm4, %vm1275_vm3 }
 0x2f0   :  { %1178 = vmatpush1.msra.mxu0 %v1130_v46  ;;  %v898_v49 = vpop.f32.mrf.mxu0  ;;  %v908_v50 = vpop.f32.mrf.mxu1  ;;  %v1508_v44 = vsel %vm1283_vm12, 1.0, %v1717_v34  ;;  %vm2014_vm12 = vcmask 261120  }
 0x3aa   :  { %v1671_v51 = vpop.f32.mrf.mxu0  ;;  %v1679_v52 = vpop.f32.mrf.mxu1 }
 0x3ab   :  { %v1001_v53 = vadd.f32 %v1671_v51, %v1663_v47 }
 0x3ac   :  { %v995_v54 = vpop.f32.mrf.mxu0  ;;  %v1094_v55 = vpop.f32.mrf.mxu1 }
 0x3ad   :  { %v996_v56 = vadd.f32 %v995_v54, %v898_v49  ;;  %v1114_v59 = vadd.f32 %v1679_v52, %v1001_v53 }
 0x3ae   :  { %v1674_v57 = vpop.f32.mrf.mxu0  ;;  %v1682_v58 = vpop.f32.mrf.mxu1 }
 0x3af   :  { %v1113_v60 = vadd.f32 %v1094_v55, %v996_v56  ;;  %v1123_v2 = vadd.f32 %v1501_v61, %v1114_v59  ;;  %v1011_v4 = vadd.f32 %v1674_v57, %v1666_v48 }
 0x3b0   :  { %v1005_v62 = vpop.f32.mrf.mxu0  ;;  %v1104_v1 = vpop.f32.mrf.mxu1 }
 0x3b1   :  { %v1122_v63 = vadd.f32 %v1501_v61, %v1113_v60  ;;  %v1006_v0 = vadd.f32 %v1005_v62, %v908_v50  ;;  %v1127_v6 = vmax.f32 %v1123_v2, 0.0  ;;  %v1116_v7 = vadd.f32 %v1682_v58, %v1011_v4  ;;  %v1516_v60 = vld [vmem:[%s2004_s4 + $0x2] ss:$0 sm:$0xff] }
 0x3b3   :  { %v1126_v3 = vmax.f32 %v1122_v63, 0.0  ;;  %v1115_v5 = vadd.f32 %v1104_v1, %v1006_v0  ;;  %v1125_v9 = vadd.f32 %v1501_v61, %v1116_v7 }
 0x3b5   :  { %1502 = vmatmul.mubr.msk.f32.vlgmr.msra.gmra.mxu0 %vm1134_vm5, %v1126_v3  ;;  %v1124_v8 = vadd.f32 %v1501_v61, %v1115_v5  ;;  %v1129_v11 = vmax.f32 %v1125_v9, 0.0 }
 0x3b6   :  { %1217 = vmatprep.mubr.f32.mxu0 %v1717_v34 }
 0x3b7   :  { %v1128_v10 = vmax.f32 %v1124_v8, 0.0 }
 0x3b9   :  { %1503 = vmatmul.mubr.msk.f32.gmra.mxu0 %vm1134_vm5, %v1127_v6 }
 0x3ba   :  { %1223 = vmatprep.mubr.f32.mxu0 %v1717_v34 }
 0x3bd   :  { %1504 = vmatmul.mubr.msk.f32.gmra.mxu0 %vm1134_vm5, %v1128_v10 }
 0x3be   :  { %1229 = vmatprep.mubr.f32.mxu0 %v1717_v34 }
 0x3c1   :  { %1505 = vmatmul.mubr.msk.f32.gmra.mxu0 %vm1134_vm5, %v1129_v11  ;;  %vm1286_vm5 = vmand %vm1254_vm11, %vm1278_vm10  ;;  %vm1972_vm11 = vcmp.lt.s32.totalorder %v1802_v24, %v1315_v29  ;;  %v1507_v24 = vsel %vm1282_vm6, 1.0, %v1717_v34 }
 0x3c2   :  { %vm1284_vm10 = vmand %vm1252_vm1, %vm1276_vm0  ;;  %v1511_v36 = vsel %vm1286_vm5, 1.0, %v1717_v34 }
 0x3c3   :  { %vm1281_vm0 = vmand %vm1249_vm9, %vm1273_vm8  ;;  %v1509_v42 = vsel %vm1284_vm10, 1.0, %v1717_v34 }
 0x3c4   :  { %vm1317_vm1 = vmand %vm1978_vm13, %vm1972_vm11  ;;  %v1506_v47 = vsel %vm1281_vm0, 1.0, %v1717_v34 }
 0x3c5   :  { %v1514_v50 = vsel %vm1317_vm1, 1.0, %v1717_v34 }
 0x475   :  { %v1213_v16 = vpop.f32.mrf.mxu0 }
 0x476   :  { %v1305_v49 = vmul.f32 %v1506_v47, %v1213_v16 }
 0x477   :  { %v1215_v17 = vpop.f32.mrf.mxu0 }
 0x478   :  { %v1306_v48 = vmul.f32 %v1507_v24, %v1215_v17 }
 0x479   :  { %v1219_v19 = vpop.f32.mrf.mxu0 }
 0x47a   :  { %v1307_v46 = vmul.f32 %v1508_v44, %v1219_v19 }
 0x47b   :  { %v1221_v23 = vpop.f32.mrf.mxu0 }
 0x47c   :  { %v1308_v45 = vmul.f32 %v1509_v42, %v1221_v23 }
 0x47d   :  { %v1225_v25 = vpop.f32.mrf.mxu0 }
 0x47e   :  { %v1309_v43 = vmul.f32 %v1510_v40, %v1225_v25 }
 0x47f   :  { %v1227_v26 = vpop.f32.mrf.mxu0 }
 0x480   :  { %v1310_v41 = vmul.f32 %v1511_v36, %v1227_v26 }
 0x481   :  { %v1231_v30 = vpop.f32.mrf.mxu0 }
 0x482   :  { %v1311_v38 = vmul.f32 %v1512_v22, %v1231_v30 }
 0x483   :  { %v1233_v37 = vpop.f32.mrf.mxu0 }
 0x484   :  { %v1312_v33 = vmul.f32 %v1513_v32, %v1233_v37 }
 0x486   :  { %1347 = vmatprep.subr.mxu1 %v1312_v33 }
 0x487   :  { %1348 = vmatpush1.msra.mxu1 %v1311_v38 }
 0x488   :  { %1349 = vmatprep.subr.mxu1 %v1310_v41 }
 0x489   :  { %1350 = vmatpush1.msra.mxu1 %v1309_v43 }
 0x48a   :  { %1351 = vmatprep.subr.mxu1 %v1308_v45 }
 0x48b   :  { %1352 = vmatpush1.msra.mxu1 %v1307_v46 }
 0x48c   :  { %1353 = vmatprep.subr.mxu1 %v1306_v48 }
 0x48d   :  { %1354 = vmatpush1.msra.mxu1 %v1305_v49 }
 0x48e   :  { %1515 = vmatmul.mubr.msk.f32.vlgmr.msra.gmra.mxu1 %vm2014_vm12, %v1514_v50 }
 0x54e   :  { %v1389_v51 = vpop.f32.mrf.mxu1 }
 0x54f   :  { %1396 = vrot.lane.b32.xlu0 %v1389_v51, %s1718_s3 }
 0x550   :  { %v1391_v52 = vpop.f32.mrf.mxu1 }
 0x551   :  { %1398 = vrot.lane.b32.xlu1 %v1391_v52, %s1718_s3 }
 0x5c1   :  { %v1397_v53 = vpop.permute.xlu0 %1396 }
 0x5c3   :  { %v1399_v54 = vpop.permute.xlu1 %1398 }
 0x5c4   :  { %v1401_v55 = vsel %vm1400_vm14, %v1397_v53, %v1399_v54 }
 0x5c5   :  { %v1403_v56 = vadd.f32 %v1401_v55, %v1389_v51 }
 0x5c7   :  { %1405 = vrot.lane.b32.xlu0 %v1403_v56, %s1719_s5 }
 0x639   :  { %v1406_v57 = vpop.permute.xlu0 %1405 }
 0x63a   :  { %v1408_v58 = vadd.f32 %v1406_v57, %v1403_v56 }
 0x63c   :  { %1410 = vrot.lane.b32.xlu1 %v1408_v58, %s1720_s9 }
 0x6ae   :  { %v1411_v34 = vpop.permute.xlu1 %1410 }
 0x6af   :  { %v1413_v59 = vadd.f32 %v1411_v34, %v1408_v58 }
 0x6b1   :  { %1415 = vrot.lane.b32.xlu0 %v1413_v59, %s1721_s10 }
 0x723   :  { %v1416_v61 = vpop.permute.xlu0 %1415 }
 0x724   :  { %v1418_v62 = vadd.f32 %v1416_v61, %v1413_v59 }
 0x726   :  { %v1424_v63 = vadd.f32 %v1516_v60, %v1418_v62 }
 0x728   :  { %1426 = vst.msk [vmem:[#allocation2] sm:$0x3] %vm1425_vm2, %v1424_v63 }
 0x729   :  { %1705 = shalt.err (!%p1702_p4)
}
 0x72a   :  { %1436 = dma.vmem_to_hbm [thread:$0]  %s1434_s13, 32, %s2006_s6, [#allocation3]  }
 0x72b   :  { %1714 = dma.done.wait [#allocation3], 32  }
 0x72c   :  { %1715 = vsyncadd [#allocation3], 4294967264 }
 0x72d   :  { %1440 = vsyncpa [#allocation3], 1 }

</bundles_post_ra>
